<compile_context>
chip_gen: v7x
topology: tpu7x:2x2x1
jax: 0.10.0
libtpu: 0.0.40
codegen_flags: <defaults>
</compile_context>

<pallas_src>
import functools
import math

import jax
import jax.numpy as jnp
from jax.experimental import pallas as pl
from jax.experimental.pallas import tpu as pltpu


# ---------------------------------------------------------------------------
# Kernel: fused AdaptiveAvgPool2d(1) -> 1x1 conv -> SiLU -> 1x1 conv -> Sigmoid
# ---------------------------------------------------------------------------
def chattn_kernel(x_ref, w1_ref, b1_ref, w2_ref, b2_ref, o_ref, *, inv_hw):
    """One batch tile per grid step; all refs live in VMEM.

    x_ref : (TB, C, HW_pad) input tile, spatial flattened onto lanes (zero
                            padded past the true HW, so the sum is exact)
    w*_ref: (C, C)          1x1-conv weights pre-transposed to (in, out)
    b*_ref: (1, C)          biases
    o_ref : (TB, C)         channel-attention weights
    """
    # AdaptiveAvgPool2d(1): lane-axis (XLU) reduce, fused to the ref read (no
    # separate `x = x_ref[...]` binding) and accumulated in f32 so a bf16 input
    # stream stays exact.  If bundle dumps ever show vld/vst spill traffic at
    # very large tiles, switch this to a short unrolled per-128-lane-chunk
    # accumulation; at the tile sizes chosen below it is not needed.
    pooled = jnp.sum(x_ref[...].astype(jnp.float32), axis=-1) * inv_hw   # (TB, C)

    # Conv2d(dim, dim, 1) on a (., C, 1, 1) tensor == pooled @ W(in,out) + b.
    h = jnp.dot(pooled, w1_ref[...], preferred_element_type=jnp.float32) + b1_ref[...]
    h = h * jax.nn.sigmoid(h)                                            # SiLU
    h = jnp.dot(h, w2_ref[...], preferred_element_type=jnp.float32) + b2_ref[...]
    o_ref[...] = jax.nn.sigmoid(h).astype(o_ref.dtype)                   # (TB, C)


# ---------------------------------------------------------------------------
# Tile-size heuristic
# ---------------------------------------------------------------------------
def _pick_batch_tile(B, bytes_per_row):
    """Pick a batch tile that (a) moves ~8 MiB of x per grid step so the HBM
    stream amortizes per-step overhead, (b) keeps 2x double-buffered tiles
    within the 32 MiB scoped-VMEM budget requested below, (c) yields >= 2 grid
    steps on larger batches so v7x megacore can shard the 'parallel' axis, and
    (d) keeps the output block's sublane dim a multiple of 8 (or the full B)."""
    TARGET_TILE_BYTES = 8 << 20
    desired = max(1, TARGET_TILE_BYTES // max(1, bytes_per_row))
    if desired >= B:
        tile = B
    else:
        tile = min(B, max(8, (desired // 8) * 8))
    # Ensure >= 2 grid steps when the batch is big enough for it to matter.
    if tile == B and B >= 16:
        half = -(-B // 2)                    # cdiv(B, 2)
        tile = min(B, ((half + 7) // 8) * 8)
    return tile


# ---------------------------------------------------------------------------
# Wrapper
# ---------------------------------------------------------------------------
def chattn_block(x, w1, b1, w2, b2, *, batch_tile=None):
    """Fused CHattnblock forward.

    x      : (B, C, H, W) NCHW, f32 or bf16.
    w1, w2 : (C, C) 1x1-conv weights pre-transposed to (in, out) layout.
    b1, b2 : (1, C) biases.
    Returns (B, C, 1, 1) f32 channel-attention weights.
    """
    B, C, H, W = x.shape
    HW = H * W
    itemsize = jnp.dtype(x.dtype).itemsize

    # Flatten spatial dims onto lanes; pad to a multiple of 128 so the x DMA
    # and the lane reduce stay lane-dense.  Zeros don't change the sum and
    # inv_hw uses the true HW, so the mean is exact.
    x3 = x.reshape(B, C, HW)
    HW_pad = ((HW + 127) // 128) * 128
    if HW_pad != HW:
        x3 = jnp.pad(x3, ((0, 0), (0, 0), (0, HW_pad - HW)))

    if batch_tile is None:
        batch_tile = _pick_batch_tile(B, C * HW_pad * itemsize)
    grid = (pl.cdiv(B, batch_tile),)

    kernel = functools.partial(chattn_kernel, inv_hw=1.0 / HW)

    cost = pl.CostEstimate(
        flops=int(B * C * HW + 4 * B * C * C),
        transcendentals=int(2 * B * C),
        bytes_accessed=int(B * C * HW_pad * itemsize
                           + 2 * C * C * 4 + 2 * C * 4 + B * C * 4),
    )

    out = pl.pallas_call(
        kernel,
        out_shape=jax.ShapeDtypeStruct((B, C), jnp.float32),
        grid=grid,
        in_specs=[
            pl.BlockSpec((batch_tile, C, HW_pad), lambda i: (i, 0, 0)),  # x tile
            pl.BlockSpec((C, C), lambda i: (0, 0)),                      # conv1 W (in,out)
            pl.BlockSpec((1, C), lambda i: (0, 0)),                      # conv1 b
            pl.BlockSpec((C, C), lambda i: (0, 0)),                      # conv2 W (in,out)
            pl.BlockSpec((1, C), lambda i: (0, 0)),                      # conv2 b
        ],
        out_specs=pl.BlockSpec((batch_tile, C), lambda i: (i, 0)),
        compiler_params=pltpu.CompilerParams(
            dimension_semantics=("parallel",),
            # 2 x 8 MiB double-buffered x tiles + weights fit comfortably;
            # 32 MiB scoped VMEM is legal on v5e/v6e/v7x alike (raises v5e's
            # 16 MiB default, matches the v6e/v7x default).
            vmem_limit_bytes=32 << 20,
        ),
        cost_estimate=cost,
    )(x3, w1, b1, w2, b2)

    return out.reshape(B, C, 1, 1)


# ----------------------------- pure-JAX reference -----------------------------
def chattn_ref(x, w1, b1, w2, b2):
    B, C, H, W = x.shape
    pooled = jnp.mean(x.astype(jnp.float32), axis=(2, 3))   # (B, C)
    h = pooled @ w1 + b1
    h = h * jax.nn.sigmoid(h)                                # SiLU
    h = h @ w2 + b2
    return jax.nn.sigmoid(h).reshape(B, C, 1, 1)


if __name__ == "__main__":
    key = jax.random.PRNGKey(0)
    kx, k1, k2, k3, k4, kx2 = jax.random.split(key, 6)

    # Module default dim=64.
    C = 64
    # PyTorch Conv2d(1x1) default init: uniform(-1/sqrt(fan_in), 1/sqrt(fan_in)),
    # generated directly in (in, out) layout so pooled @ W + b matches
    # conv(W[out, in, 1, 1]) exactly.
    bound = 1.0 / math.sqrt(C)
    w1 = jax.random.uniform(k1, (C, C), jnp.float32, -bound, bound)
    b1 = jax.random.uniform(k2, (1, C), jnp.float32, -bound, bound)
    w2 = jax.random.uniform(k3, (C, C), jnp.float32, -bound, bound)
    b2 = jax.random.uniform(k4, (1, C), jnp.float32, -bound, bound)

    # Case 1: canonical small shape (HW = 256, lane-dense, single tile).
    x = jax.random.normal(kx, (2, C, 16, 16), jnp.float32)
    out = jax.block_until_ready(chattn_block(x, w1, b1, w2, b2))
    ref = chattn_ref(x, w1, b1, w2, b2)
    assert out.shape == (2, C, 1, 1)
    assert jnp.allclose(out, ref, rtol=1e-4, atol=1e-5), \
        f"case1 max abs err {jnp.max(jnp.abs(out - ref))}"

    # Case 2: multi-step grid with a ragged last tile and a spatial size whose
    # HW (7*7=49) is not a multiple of 128 (padded to 128 lanes in the wrapper).
    x2 = jax.random.normal(kx2, (10, C, 7, 7), jnp.float32)
    out2 = jax.block_until_ready(chattn_block(x2, w1, b1, w2, b2, batch_tile=8))
    ref2 = chattn_ref(x2, w1, b1, w2, b2)
    assert jnp.allclose(out2, ref2, rtol=1e-4, atol=1e-5), \
        f"case2 max abs err {jnp.max(jnp.abs(out2 - ref2))}"

    # Case 3: bf16 input stream (pool accumulated in f32 inside the kernel).
    xb = x.astype(jnp.bfloat16)
    out3 = jax.block_until_ready(chattn_block(xb, w1, b1, w2, b2))
    ref3 = chattn_ref(xb, w1, b1, w2, b2)
    assert jnp.allclose(out3, ref3, rtol=1e-3, atol=1e-4), \
        f"case3 max abs err {jnp.max(jnp.abs(out3 - ref3))}"

    print("KERNEL_OK")
</pallas_src>

<mosaic_0001>
module attributes {stable_mosaic.version = 11 : i64} {
  func.func @chattn_kernel(%arg0: i32, %arg1: memref<2x64x256xf32, #tpu.memory_space<vmem>>, %arg2: memref<64x64xf32, #tpu.memory_space<vmem>>, %arg3: memref<1x64xf32, #tpu.memory_space<vmem>>, %arg4: memref<64x64xf32, #tpu.memory_space<vmem>>, %arg5: memref<1x64xf32, #tpu.memory_space<vmem>>, %arg6: memref<2x64xf32, #tpu.memory_space<vmem>>) attributes {dimension_semantics = [#tpu.dimension_semantics<parallel>], iteration_bounds = array<i64: 1>, scalar_prefetch = 0 : i64, scratch_operands = 0 : i64, tpu.core_type = #tpu.core_type<tc>, window_params = [{transform_indices = @transform_0, window_bounds = array<i64: 2, 64, 256>}, {pipeline_mode = #tpu.pipeline_mode<synchronous>, transform_indices = @transform_1, window_bounds = array<i64: 64, 64>}, {pipeline_mode = #tpu.pipeline_mode<synchronous>, transform_indices = @transform_2, window_bounds = array<i64: 1, 64>}, {pipeline_mode = #tpu.pipeline_mode<synchronous>, transform_indices = @transform_3, window_bounds = array<i64: 64, 64>}, {pipeline_mode = #tpu.pipeline_mode<synchronous>, transform_indices = @transform_4, window_bounds = array<i64: 1, 64>}, {transform_indices = @transform_5, window_bounds = array<i64: 2, 64>}]} {
    %c0 = arith.constant 0 : index
    %c0_0 = arith.constant 0 : index
    %c0_1 = arith.constant 0 : index
    %0 = vector.load %arg1[%c0, %c0_0, %c0_1] : memref<2x64x256xf32, #tpu.memory_space<vmem>>, vector<2x64x256xf32>
    %cst = arith.constant dense<0.000000e+00> : vector<2x64xf32>
    %1 = vector.multi_reduction <add>, %0, %cst [2] : vector<2x64x256xf32> to vector<2x64xf32>
    %cst_2 = arith.constant 3.906250e-03 : f32
    %2 = vector.broadcast %cst_2 : f32 to vector<2x64xf32>
    %3 = arith.mulf %1, %2 : vector<2x64xf32>
    %c0_3 = arith.constant 0 : index
    %c0_4 = arith.constant 0 : index
    %4 = vector.load %arg2[%c0_3, %c0_4] : memref<64x64xf32, #tpu.memory_space<vmem>>, vector<64x64xf32>
    %cst_5 = arith.constant dense<0.000000e+00> : vector<2x64xf32>
    %5 = tpu.matmul %3, %4, %cst_5 {dimension_numbers = #tpu.dot_dimension_numbers<[1], [0], [0], [1], [0, 0, 1, 1], [], []>} : vector<2x64xf32>, vector<64x64xf32>, vector<2x64xf32> -> vector<2x64xf32>
    %c0_6 = arith.constant 0 : index
    %c0_7 = arith.constant 0 : index
    %6 = vector.load %arg3[%c0_6, %c0_7] : memref<1x64xf32, #tpu.memory_space<vmem>>, vector<1x64xf32>
    %7 = vector.broadcast %6 : vector<1x64xf32> to vector<2x64xf32>
    %8 = arith.addf %5, %7 : vector<2x64xf32>
    %9 = arith.negf %8 : vector<2x64xf32>
    %10 = math.exp %9 : vector<2x64xf32>
    %cst_8 = arith.constant 1.000000e+00 : f32
    %11 = vector.broadcast %cst_8 : f32 to vector<2x64xf32>
    %12 = arith.addf %11, %10 : vector<2x64xf32>
    %13 = arith.divf %11, %12 : vector<2x64xf32>
    %14 = arith.mulf %8, %13 : vector<2x64xf32>
    %c0_9 = arith.constant 0 : index
    %c0_10 = arith.constant 0 : index
    %15 = vector.load %arg4[%c0_9, %c0_10] : memref<64x64xf32, #tpu.memory_space<vmem>>, vector<64x64xf32>
    %cst_11 = arith.constant dense<0.000000e+00> : vector<2x64xf32>
    %16 = tpu.matmul %14, %15, %cst_11 {dimension_numbers = #tpu.dot_dimension_numbers<[1], [0], [0], [1], [0, 0, 1, 1], [], []>} : vector<2x64xf32>, vector<64x64xf32>, vector<2x64xf32> -> vector<2x64xf32>
    %c0_12 = arith.constant 0 : index
    %c0_13 = arith.constant 0 : index
    %17 = vector.load %arg5[%c0_12, %c0_13] : memref<1x64xf32, #tpu.memory_space<vmem>>, vector<1x64xf32>
    %18 = vector.broadcast %17 : vector<1x64xf32> to vector<2x64xf32>
    %19 = arith.addf %16, %18 : vector<2x64xf32>
    %20 = arith.negf %19 : vector<2x64xf32>
    %21 = math.exp %20 : vector<2x64xf32>
    %cst_14 = arith.constant 1.000000e+00 : f32
    %22 = vector.broadcast %cst_14 : f32 to vector<2x64xf32>
    %23 = arith.addf %22, %21 : vector<2x64xf32>
    %24 = arith.divf %22, %23 : vector<2x64xf32>
    %c0_15 = arith.constant 0 : index
    %c0_16 = arith.constant 0 : index
    %25 = vector.load %arg6[%c0_15, %c0_16] : memref<2x64xf32, #tpu.memory_space<vmem>>, vector<2x64xf32>
    tpu.vector_store %arg6[%c0_15, %c0_16], %24 {strides = array<i32>} : memref<2x64xf32, #tpu.memory_space<vmem>>, vector<2x64xf32>,
    return
  }
  func.func @transform_0(%arg0: i32) -> (i32, i32, i32) {
    %c0_i32 = arith.constant 0 : i32
    %c0_i32_0 = arith.constant 0 : i32
    %c0_i32_1 = arith.constant 0 : i32
    return %arg0, %c0_i32, %c0_i32_0 : i32, i32, i32
  }
  func.func @transform_1(%arg0: i32) -> (i32, i32) {
    %c0_i32 = arith.constant 0 : i32
    %c0_i32_0 = arith.constant 0 : i32
    %c0_i32_1 = arith.constant 0 : i32
    return %c0_i32, %c0_i32_0 : i32, i32
  }
  func.func @transform_2(%arg0: i32) -> (i32, i32) {
    %c0_i32 = arith.constant 0 : i32
    %c0_i32_0 = arith.constant 0 : i32
    %c0_i32_1 = arith.constant 0 : i32
    return %c0_i32, %c0_i32_0 : i32, i32
  }
  func.func @transform_3(%arg0: i32) -> (i32, i32) {
    %c0_i32 = arith.constant 0 : i32
    %c0_i32_0 = arith.constant 0 : i32
    %c0_i32_1 = arith.constant 0 : i32
    return %c0_i32, %c0_i32_0 : i32, i32
  }
  func.func @transform_4(%arg0: i32) -> (i32, i32) {
    %c0_i32 = arith.constant 0 : i32
    %c0_i32_0 = arith.constant 0 : i32
    %c0_i32_1 = arith.constant 0 : i32
    return %c0_i32, %c0_i32_0 : i32, i32
  }
  func.func @transform_5(%arg0: i32) -> (i32, i32) {
    %c0_i32 = arith.constant 0 : i32
    %c0_i32_0 = arith.constant 0 : i32
    return %arg0, %c0_i32 : i32, i32
  }
}

</mosaic_0001>

<bundles_post_ra>
// kernel: tpu_custom_call.1
= control target key start
LH: loop header
LB: loop body
LE: loop exit
PB: predicated region body
PF: predicated region fallthrough
CT: control target
= control target key end

     0   :  { %10 = vsyncpa [#allocation3], 0  ;;  %s799_s0 = inlined_call_operand.hbm [shape: f32[2,64,256], index: 0, kind: input, shape index: {}]   ;;  %s800_s1 = inlined_call_operand.hbm [shape: f32[64,64], index: 1, kind: input, shape index: {}]   ;;  %s801_s2 = inlined_call_operand.vmem [shape: f32[1,64], index: 2, kind: input, shape index: {}]   ;;  %s802_s3 = inlined_call_operand.hbm [shape: f32[64,64], index: 3, kind: input, shape index: {}]   ;;  %s803_s4 = inlined_call_operand.vmem [shape: f32[1,64], index: 4, kind: input, shape index: {}]   ;;  %s804_s5 = inlined_call_operand.hbm [shape: f32[2,64], index: 5, kind: output, shape index: {}]  }
   0x1   :  { %11 = vsyncpa [#allocation6], 0 }
   0x2   :  { %12 = vsyncpa [#allocation4], 0  ;;  %s676_s18 = smov [#allocation5]   ;;  %s582_s22 = scalar_lea.hbm %s800_s1, 1024 }
   0x3   :  { %s30_s19 = sshll.u32 %s676_s18, 4  ;;  %p583_p0 = scmp.ne.s32.totalorder %s800_s1, %s582_s22  ;;  %s31_s19 = int_to_ptr.vmem [resolvable:$true] %s30_s19 }
   0x4   :  { %p586_p1 = scmp.lt.u32.totalorder %s582_s22, %s800_s1 }
   0x6   :  { %p588_p2 = pnand %p586_p1, %p583_p0 }
   0x8   :  { %591 = shalt.err (!%p588_p2)
}
   0x9   :  { %s592_s27 = scalar_lea.vmem %s31_s19, 1024  ;;  %p597_p4 = scmp.lt.s32.totalorder %s31_s19, %s31_s19 }
   0xa   :  { %p593_p3 = scmp.ne.s32.totalorder %s31_s19, %s592_s27  ;;  %p598_p5 = scmp.lt.s32.totalorder %s592_s27, %s592_s27 }
   0xc   :  { %p599_p6 = por %p598_p5, %p597_p4 }
   0xe   :  { %p600_p7 = pnand %p599_p6, %p593_p3 }
  0x10   :  { %603 = shalt.err (!%p600_p7)
}
  0x11   :  { %s677_s28 = smov 128   ;;  %s678_s29 = smov 8  }
  0x12   :  { %36 = dma.hbm_to_vmem [thread:$0]  %s800_s1, 1024, %s31_s19, [#allocation6], %s677_s28, %s677_s28, %s678_s29  }
  0x13   :  { %s679_s7 = smov [#allocation2]   ;;  %s604_s11 = scalar_lea.hbm %s799_s0, 4096 }
  0x14   :  { %s18_s8 = sshll.u32 %s679_s7, 4  ;;  %p605_p8 = scmp.ne.s32.totalorder %s799_s0, %s604_s11  ;;  %s19_s8 = int_to_ptr.vmem [resolvable:$true] %s18_s8 }
  0x15   :  { %p608_p9 = scmp.lt.u32.totalorder %s604_s11, %s799_s0 }
  0x17   :  { %p610_p10 = pnand %p608_p9, %p605_p8 }
  0x19   :  { %613 = shalt.err (!%p610_p10)
}
  0x1a   :  { %s614_s16 = scalar_lea.vmem %s19_s8, 4096  ;;  %p619_p12 = scmp.lt.s32.totalorder %s19_s8, %s19_s8 }
  0x1b   :  { %p615_p11 = scmp.ne.s32.totalorder %s19_s8, %s614_s16  ;;  %p620_p13 = scmp.lt.s32.totalorder %s614_s16, %s614_s16 }
  0x1d   :  { %p621_p0 = por %p620_p13, %p619_p12 }
  0x1f   :  { %p622_p1 = pnand %p621_p0, %p615_p11 }
  0x21   :  { %625 = shalt.err (!%p622_p1)
}
  0x22   :  { %s680_s1 = smov 256   ;;  %s681_s17 = smov 16  }
  0x23   :  { %24 = dma.hbm_to_vmem [thread:$0]  %s799_s0, 4096, %s19_s8, [#allocation3], %s680_s1, %s680_s1, %s681_s17  }
  0x24   :  { %s682_s20 = smov [#allocation7]   ;;  %s626_s24 = scalar_lea.hbm %s802_s3, 1024 }
  0x25   :  { %s44_s21 = sshll.u32 %s682_s20, 4  ;;  %p627_p2 = scmp.ne.s32.totalorder %s802_s3, %s626_s24  ;;  %s45_s21 = int_to_ptr.vmem [resolvable:$true] %s44_s21 }
  0x26   :  { %p630_p3 = scmp.lt.u32.totalorder %s626_s24, %s802_s3 }
  0x28   :  { %p632_p4 = pnand %p630_p3, %p627_p2 }
  0x2a   :  { %635 = shalt.err (!%p632_p4)
}
  0x2b   :  { %s636_s6 = scalar_lea.vmem %s45_s21, 1024  ;;  %p641_p6 = scmp.lt.s32.totalorder %s45_s21, %s45_s21 }
  0x2c   :  { %p637_p5 = scmp.ne.s32.totalorder %s45_s21, %s636_s6  ;;  %p642_p7 = scmp.lt.s32.totalorder %s636_s6, %s636_s6 }
  0x2e   :  { %p643_p8 = por %p642_p7, %p641_p6 }
  0x30   :  { %p644_p9 = pnand %p643_p8, %p637_p5 }
  0x32   :  { %647 = shalt.err (!%p644_p9)
}
  0x33   :  { %50 = dma.hbm_to_vmem [thread:$0]  %s802_s3, 1024, %s45_s21, [#allocation6], %s677_s28, %s677_s28, %s678_s29  }
  0x34   :  { %670 = dma.done.wait [#allocation3], 4096  }
  0x35   :  { %671 = vsyncadd [#allocation3], 4294963200 }
  0x36   :  { %672 = dma.done.wait [#allocation6], 2048  }
  0x37   :  { %673 = vsyncadd [#allocation6], 4294965248  ;;  %v78_v0 = vld [vmem:[#allocation2 + $0x80] sm:$0xff]  ;;  %v79_v1 = vld [vmem:[#allocation2 + $0x88] sm:$0xff]  ;;  %v683_v51 = vmov 0.0|0.0   ;;  %vm684_vm0 = vmmov 0  }
  0x38   :  { %v62_v2 = vld [vmem:[#allocation2] sm:$0xff]  ;;  %v118_v3 = vadd.f32 %v79_v1, %v78_v0  ;;  %v63_v4 = vld [vmem:[#allocation2 + $0x8] sm:$0xff]  ;;  %v80_v5 = vld [vmem:[#allocation2 + $0x90] sm:$0xff]  ;;  %539 = vmatprep.subr.bf16.mxu0 %v683_v51  ;;  %551 = vmatprep.subr.bf16.mxu1 %v683_v51  ;;  %v685_v61 = vmov 0.0   ;;  %vm200_vm1 = vcmask 130112   ;;  %vm207_vm2 = vcmask 195712  }
  0x39   :  { %v81_v6 = vld [vmem:[#allocation2 + $0x98] sm:$0xff]  ;;  %v94_v7 = vadd.f32 %v63_v4, %v62_v2  ;;  %v64_v8 = vld [vmem:[#allocation2 + $0x10] sm:$0xff]  ;;  %v82_v12 = vld [vmem:[#allocation2 + $0xa0] sm:$0xff]  ;;  %517 = vmatprep.mubr.msk.f32.mxu0 %vm684_vm0, %v685_v61  ;;  %536 = vmatprep.mubr.msk.f32.mxu1 %vm684_vm0, %v685_v61  ;;  %v189_v2 = vlaneseq  ;;  %vm214_vm3 = vcmask 261312   ;;  %vm221_vm4 = vcmask 326912  }
  0x3a   :  { %v65_v9 = vld [vmem:[#allocation2 + $0x18] sm:$0xff]  ;;  %119 = vadd.xlane.f32.xlu1 %v118_v3  ;;  %v121_v10 = vadd.f32 %v81_v6, %v80_v5  ;;  %v83_v13 = vld [vmem:[#allocation2 + $0xa8] sm:$0xff]  ;;  %v66_v14 = vld [vmem:[#allocation2 + $0x20] sm:$0xff]  ;;  %vm228_vm5 = vcmask 392512   ;;  %vm235_vm6 = vcmask 458112   ;;  %vm242_vm7 = vcmask 523712  }
  0x3b   :  { %95 = vadd.xlane.f32.xlu0 %v94_v7  ;;  %v97_v11 = vadd.f32 %v65_v9, %v64_v8  ;;  %v67_v15 = vld [vmem:[#allocation2 + $0x28] sm:$0xff]  ;;  %v124_v16 = vadd.f32 %v83_v13, %v82_v12  ;;  %v84_v18 = vld [vmem:[#allocation2 + $0xb0] sm:$0xff]  ;;  %v85_v19 = vld [vmem:[#allocation2 + $0xb8] sm:$0xff]  ;;  %v190_v5 = vand.u32 127, %v189_v2  ;;  %v192_v7 = vshrl.u32 %v189_v2, 7 }
  0x3c   :  { %v100_v17 = vadd.f32 %v67_v15, %v66_v14  ;;  %v68_v20 = vld [vmem:[#allocation2 + $0x30] sm:$0xff]  ;;  %v69_v21 = vld [vmem:[#allocation2 + $0x38] sm:$0xff]  ;;  %v127_v22 = vadd.f32 %v85_v19, %v84_v18  ;;  %v86_v24 = vld [vmem:[#allocation2 + $0xc0] sm:$0xff]  ;;  %vm283_vm8 = vcmask 1041409   ;;  %vm285_vm9 = vcmask 523264  }
  0x3d   :  { %v103_v23 = vadd.f32 %v69_v21, %v68_v20  ;;  %v87_v25 = vld [vmem:[#allocation2 + $0xc8] sm:$0xff]  ;;  %v70_v26 = vld [vmem:[#allocation2 + $0x40] sm:$0xff]  ;;  %v88_v30 = vld [vmem:[#allocation2 + $0xd0] sm:$0xff]  ;;  %v195_v9 = vadd.s32 4294967288, %v190_v5  ;;  %v216_v12 = vadd.s32 4294967264, %v190_v5  ;;  %v223_v14 = vadd.s32 4294967256, %v190_v5 }
  0x3e   :  { %122 = vadd.xlane.f32.xlu1 %v121_v10  ;;  %v71_v27 = vld [vmem:[#allocation2 + $0x48] sm:$0xff]  ;;  %v130_v28 = vadd.f32 %v87_v25, %v86_v24  ;;  %v89_v31 = vld [vmem:[#allocation2 + $0xd8] sm:$0xff]  ;;  %v72_v32 = vld [vmem:[#allocation2 + $0x50] sm:$0xff]  ;;  %v202_v10 = vadd.s32 4294967280, %v190_v5  ;;  %v193_v15 = vsub.s32 %v190_v5, %v192_v7  ;;  %v230_v19 = vadd.s32 4294967248, %v190_v5 }
  0x3f   :  { %98 = vadd.xlane.f32.xlu0 %v97_v11  ;;  %v106_v29 = vadd.f32 %v71_v27, %v70_v26  ;;  %v73_v33 = vld [vmem:[#allocation2 + $0x58] sm:$0xff]  ;;  %v133_v34 = vadd.f32 %v89_v31, %v88_v30  ;;  %v90_v36 = vld [vmem:[#allocation2 + $0xe0] sm:$0xff]  ;;  %v91_v37 = vld [vmem:[#allocation2 + $0xe8] sm:$0xff]  ;;  %v209_v11 = vadd.s32 4294967272, %v190_v5  ;;  %v226_v25 = vsub.s32 %v223_v14, %v192_v7 }
  0x40   :  { %v109_v35 = vadd.f32 %v73_v33, %v72_v32  ;;  %v74_v38 = vld [vmem:[#allocation2 + $0x60] sm:$0xff]  ;;  %v75_v39 = vld [vmem:[#allocation2 + $0x68] sm:$0xff]  ;;  %v136_v40 = vadd.f32 %v91_v37, %v90_v36  ;;  %v92_v42 = vld [vmem:[#allocation2 + $0xf0] sm:$0xff]  ;;  %v205_v18 = vsub.s32 %v202_v10, %v192_v7  ;;  %vm459_vm10 = vcmask 517120  }
  0x41   :  { %v112_v41 = vadd.f32 %v75_v39, %v74_v38  ;;  %v93_v43 = vld [vmem:[#allocation2 + $0xf8] sm:$0xff]  ;;  %v76_v44 = vld [vmem:[#allocation2 + $0x70] sm:$0xff]  ;;  %v158_v48 = vld [vmem:[#allocation5] sm:$0xff]  ;;  %v212_v21 = vsub.s32 %v209_v11, %v192_v7  ;;  %v237_v38 = vadd.s32 4294967240, %v190_v5 }
  0x42   :  { %125 = vadd.xlane.f32.xlu1 %v124_v16  ;;  %v77_v45 = vld [vmem:[#allocation2 + $0x78] sm:$0xff]  ;;  %v139_v46 = vadd.f32 %v93_v43, %v92_v42  ;;  %v159_v49 = vld [vmem:[#allocation5 + $0x8] sm:$0xff]  ;;  %v160_v52 = vld [vmem:[#allocation5 + $0x10] sm:$0xff] }
  0x43   :  { %101 = vadd.xlane.f32.xlu0 %v100_v17  ;;  %v115_v47 = vadd.f32 %v77_v45, %v76_v44  ;;  %v540_v50 = vpack.c.bf16 %v159_v49, %v158_v48  ;;  %v161_v53 = vld [vmem:[#allocation5 + $0x18] sm:$0xff]  ;;  %v162_v55 = vld [vmem:[#allocation5 + $0x20] sm:$0xff]  ;;  %v163_v56 = vld [vmem:[#allocation5 + $0x28] sm:$0xff]  ;;  %v198_v17 = vsub.s32 %v195_v9, %v192_v7 }
  0x44   :  { %v543_v54 = vpack.c.bf16 %v161_v53, %v160_v52  ;;  %v546_v57 = vpack.c.bf16 %v163_v56, %v162_v55  ;;  %v164_v58 = vld [vmem:[#allocation5 + $0x30] sm:$0xff]  ;;  %v165_v59 = vld [vmem:[#allocation5 + $0x38] sm:$0xff]  ;;  %v240_v56 = vsub.s32 %v237_v38, %v192_v7 }
  0x45   :  { %541 = vmatpush3.bf16.msra.mxu0 %v540_v50  ;;  %v549_v60 = vpack.c.bf16 %v165_v59, %v164_v58 }
  0x46   :  { %128 = vadd.xlane.f32.xlu1 %v127_v22  ;;  %542 = vmatprep.subr.bf16.mxu0 %v683_v51  ;;  %v219_v22 = vsub.s32 %v216_v12, %v192_v7 }
  0x47   :  { %104 = vadd.xlane.f32.xlu0 %v103_v23 }
  0x49   :  { %544 = vmatpush3.bf16.msra.mxu0 %v543_v54 }
  0x4a   :  { %131 = vadd.xlane.f32.xlu1 %v130_v28  ;;  %545 = vmatprep.subr.bf16.mxu0 %v683_v51 }
  0x4b   :  { %107 = vadd.xlane.f32.xlu0 %v106_v29 }
  0x4d   :  { %547 = vmatpush3.bf16.msra.mxu0 %v546_v57 }
  0x4e   :  { %134 = vadd.xlane.f32.xlu1 %v133_v34  ;;  %548 = vmatprep.subr.bf16.mxu0 %v683_v51  ;;  %v233_v34 = vsub.s32 %v230_v19, %v192_v7  ;;  %v367_v19 = vld [vmem:[#allocation7 + $0x10] sm:$0xff] }
  0x4f   :  { %110 = vadd.xlane.f32.xlu0 %v109_v35 }
  0x51   :  { %550 = vmatpush3.bf16.msra.mxu0 %v549_v60 }
  0x52   :  { %137 = vadd.xlane.f32.xlu1 %v136_v40 }
  0x53   :  { %113 = vadd.xlane.f32.xlu0 %v112_v41 }
  0x56   :  { %140 = vadd.xlane.f32.xlu1 %v139_v46 }
  0x57   :  { %116 = vadd.xlane.f32.xlu0 %v115_v47 }
  0xc7   :  { %v120_v62 = vpop.xlane.xlu1 %119 }
  0xc8   :  { %v96_v63 = vpop.xlane.xlu0 %95  ;;  %v150_v27 = vmul.f32 0.00390625, %v120_v62 }
  0xc9   :  { %v142_v31 = vmul.f32 0.00390625, %v96_v63 }
  0xca   :  { %v247_v43 = vrot.slane %v150_v27, %v193_v15 }
  0xcb   :  { %v123_v0 = vpop.xlane.xlu1 %122  ;;  %v194_v48 = vrot.slane %v142_v31, %v193_v15 }
  0xcc   :  { %v99_v1 = vpop.xlane.xlu0 %98  ;;  %v151_v20 = vmul.f32 0.00390625, %v123_v0 }
  0xcd   :  { %v143_v23 = vmul.f32 0.00390625, %v99_v1 }
  0xce   :  { %v251_v35 = vrot.slane %v151_v20, %v198_v17  ;;  %v368_v20 = vld [vmem:[#allocation7 + $0x18] sm:$0xff] }
  0xcf   :  { %v126_v3 = vpop.xlane.xlu1 %125  ;;  %v199_v39 = vrot.slane %v143_v23, %v198_v17  ;;  %v366_v17 = vld [vmem:[#allocation7 + $0x8] sm:$0xff] }
  0xd0   :  { %v102_v4 = vpop.xlane.xlu0 %101  ;;  %v152_v24 = vmul.f32 0.00390625, %v126_v3  ;;  %v252_v53 = vsel %vm200_vm1, %v251_v35, %v247_v43  ;;  %v370_v23 = vld [vmem:[#allocation7 + $0x28] sm:$0xff] }
  0xd1   :  { %v144_v28 = vmul.f32 0.00390625, %v102_v4  ;;  %v201_v57 = vsel %vm200_vm1, %v199_v39, %v194_v48 }
  0xd2   :  { %v256_v40 = vrot.slane %v152_v24, %v205_v18 }
  0xd3   :  { %v129_v6 = vpop.xlane.xlu1 %128  ;;  %v206_v44 = vrot.slane %v144_v28, %v205_v18  ;;  %v477_v28 = vld [vmem:[%s801_s2] ss:$0 sm:$0xff]  ;;  %s686_s2 = smov [#allocation8]  }
  0xd4   :  { %v105_v8 = vpop.xlane.xlu0 %104  ;;  %v153_v29 = vmul.f32 0.00390625, %v129_v6  ;;  %v257_v58 = vsel %vm207_vm2, %v256_v40, %v252_v53  ;;  %s467_s9 = sshll.u32 %s686_s2, 4  ;;  %s468_s9 = int_to_ptr.vmem [resolvable:$true] %s467_s9 }
  0xd5   :  { %v145_v32 = vmul.f32 0.00390625, %v105_v8  ;;  %v208_v62 = vsel %vm207_vm2, %v206_v44, %v201_v57  ;;  %s648_s10 = scalar_lea.vmem %s468_s9, 32  ;;  %p653_p11 = scmp.lt.s32.totalorder %s468_s9, %s468_s9 }
  0xd6   :  { %v261_v45 = vrot.slane %v153_v29, %v212_v21  ;;  %p649_p10 = scmp.ne.s32.totalorder %s468_s9, %s648_s10  ;;  %p654_p12 = scmp.lt.s32.totalorder %s648_s10, %s648_s10 }
  0xd7   :  { %v132_v13 = vpop.xlane.xlu1 %131  ;;  %v213_v49 = vrot.slane %v145_v32, %v212_v21  ;;  %v555_v21 = vpack.c.bf16 %v368_v20, %v367_v19 }
  0xd8   :  { %v108_v16 = vpop.xlane.xlu0 %107  ;;  %v154_v33 = vmul.f32 0.00390625, %v132_v13  ;;  %v262_v63 = vsel %vm214_vm3, %v261_v45, %v257_v58  ;;  %p655_p13 = por %p654_p12, %p653_p11 }
  0xd9   :  { %v146_v36 = vmul.f32 0.00390625, %v108_v16  ;;  %v215_v3 = vsel %vm214_vm3, %v213_v49, %v208_v62  ;;  %v365_v16 = vld [vmem:[#allocation7] sm:$0xff] }
  0xda   :  { %v266_v50 = vrot.slane %v154_v33, %v219_v22  ;;  %v552_v18 = vpack.c.bf16 %v366_v17, %v365_v16  ;;  %p656_p0 = pnand %p655_p13, %p649_p10 }
  0xdb   :  { %v135_v26 = vpop.xlane.xlu1 %134  ;;  %v220_v54 = vrot.slane %v146_v36, %v219_v22  ;;  %v369_v22 = vld [vmem:[#allocation7 + $0x20] sm:$0xff] }
  0xdc   :  { %v111_v30 = vpop.xlane.xlu0 %110  ;;  %v155_v37 = vmul.f32 0.00390625, %v135_v26  ;;  %v267_v4 = vsel %vm221_vm4, %v266_v50, %v262_v63  ;;  %553 = vmatpush3.bf16.msra.mxu1 %v552_v18  ;;  %v558_v24 = vpack.c.bf16 %v370_v23, %v369_v22  ;;  %v372_v26 = vld [vmem:[#allocation7 + $0x38] sm:$0xff] }
  0xdd   :  { %v147_v41 = vmul.f32 0.00390625, %v111_v30  ;;  %v222_v6 = vsel %vm221_vm4, %v220_v54, %v215_v3  ;;  %554 = vmatprep.subr.bf16.mxu1 %v683_v51 }
  0xde   :  { %v271_v55 = vrot.slane %v155_v37, %v226_v25 }
  0xdf   :  { %v138_v42 = vpop.xlane.xlu1 %137  ;;  %v227_v59 = vrot.slane %v147_v41, %v226_v25  ;;  %v371_v25 = vld [vmem:[#allocation7 + $0x30] sm:$0xff] }
  0xe0   :  { %v156_v46 = vmul.f32 0.00390625, %v138_v42  ;;  %v114_v47 = vpop.xlane.xlu0 %113  ;;  %v272_v7 = vsel %vm228_vm5, %v271_v55, %v267_v4  ;;  %556 = vmatpush3.bf16.msra.mxu1 %v555_v21  ;;  %v561_v27 = vpack.c.bf16 %v372_v26, %v371_v25 }
  0xe1   :  { %v148_v52 = vmul.f32 0.00390625, %v114_v47  ;;  %v229_v9 = vsel %vm228_vm5, %v227_v59, %v222_v6  ;;  %557 = vmatprep.subr.bf16.mxu1 %v683_v51 }
  0xe2   :  { %v276_v60 = vrot.slane %v156_v46, %v233_v34 }
  0xe3   :  { %v141_v61 = vpop.xlane.xlu1 %140  ;;  %v234_v0 = vrot.slane %v148_v52, %v233_v34 }
  0xe4   :  { %v157_v1 = vmul.f32 0.00390625, %v141_v61  ;;  %v117_v2 = vpop.xlane.xlu0 %116  ;;  %v277_v10 = vsel %vm235_vm6, %v276_v60, %v272_v7  ;;  %559 = vmatpush3.bf16.msra.mxu1 %v558_v24 }
  0xe5   :  { %v149_v5 = vmul.f32 0.00390625, %v117_v2  ;;  %v236_v12 = vsel %vm235_vm6, %v234_v0, %v229_v9  ;;  %560 = vmatprep.subr.bf16.mxu1 %v683_v51  ;;  %v480_v51 = vld [vmem:[%s803_s4] ss:$0 sm:$0xff] }
  0xe6   :  { %v281_v8 = vrot.slane %v157_v1, %v240_v56 }
  0xe7   :  { %v241_v11 = vrot.slane %v149_v5, %v240_v56 }
  0xe8   :  { %v282_v13 = vsel %vm242_vm7, %v281_v8, %v277_v10  ;;  %562 = vmatpush3.bf16.msra.mxu1 %v561_v27 }
  0xe9   :  { %v243_v14 = vsel %vm242_vm7, %v241_v11, %v236_v12 }
  0xea   :  { %v284_v15 = vsel %vm283_vm8, %v282_v13, %v243_v14 }
  0xeb   :  { %518 = vmatmul.mubr.msk.f32.vlgmr.msra.gmra.mrb[0].mxu0 %vm285_vm9, %v284_v15 }
 0x1be   :  { %v354_v29 = vpop.f32.mrb[0].mxu0 }
 0x1bf   :  { %v355_v30 = vadd.f32 %v477_v28, %v354_v29  ;;  %v519_v31 = vpop.f32.mrb[1].mxu0 }
 0x1c1   :  { %v479_v32 = vmul.f32 -1.442695, %v355_v30 }
 0x1c3   :  { %574 = vpow2.f32 %v479_v32 }
 0x1cd   :  { %v575_v33 = vpop.eup %574 }
 0x1ce   :  { %v361_v34 = vadd.f32 1.0, %v575_v33 }
 0x1d0   :  { %576 = vrcp.f32 %v361_v34 }
 0x1da   :  { %v577_v35 = vpop.eup %576 }
 0x1db   :  { %v364_v36 = vmul.f32 %v577_v35, %v355_v30 }
 0x1dd   :  { %537 = vmatmul.mubr.msk.f32.vlgmr.msra.gmra.mrb[0].mxu1 %vm285_vm9, %v364_v36 }
 0x2b0   :  { %v449_v37 = vpop.f32.mrb[0].mxu1 }
 0x2b1   :  { %v450_v38 = vadd.f32 %v480_v51, %v449_v37  ;;  %v538_v39 = vpop.f32.mrb[1].mxu1 }
 0x2b3   :  { %v482_v40 = vmul.f32 -1.442695, %v450_v38 }
 0x2b5   :  { %578 = vpow2.f32 %v482_v40 }
 0x2bf   :  { %v579_v41 = vpop.eup %578 }
 0x2c0   :  { %v456_v42 = vadd.f32 1.0, %v579_v41 }
 0x2c2   :  { %580 = vrcp.f32 %v456_v42 }
 0x2cc   :  { %v581_v43 = vpop.eup %580 }
 0x2cd   :  { %460 = vst.msk [vmem:[#allocation8] sm:$0x3] %vm459_vm10, %v581_v43 }
 0x2ce   :  { %659 = shalt.err (!%p656_p0)
}
 0x2cf   :  { %s660_s12 = scalar_lea.hbm %s804_s5, 32 }
 0x2d0   :  { %p661_p1 = scmp.ne.s32.totalorder %s804_s5, %s660_s12  ;;  %p664_p2 = scmp.lt.u32.totalorder %s660_s12, %s804_s5 }
 0x2d2   :  { %p666_p3 = pnand %p664_p2, %p661_p1 }
 0x2d4   :  { %669 = shalt.err (!%p666_p3)
}
 0x2d5   :  { %470 = dma.vmem_to_hbm [thread:$0]  %s468_s9, 32, %s804_s5, [#allocation4]  }
 0x2d6   :  { %674 = dma.done.wait [#allocation4], 32  }
 0x2d7   :  { %675 = vsyncadd [#allocation4], 4294967264 }
 0x2d8   :  { %474 = vsyncpa [#allocation3], 1 }
 0x2d9   :  { %475 = vsyncpa [#allocation6], 1 }
 0x2da   :  { %476 = vsyncpa [#allocation4], 1 }

</bundles_post_ra>
